<compile_context>
chip_gen: v5e
topology: v5e:2x2
jax: 0.10.0
libtpu: 0.0.40
codegen_flags: <defaults>
</compile_context>

<pallas_src>
import jax
import jax.numpy as jnp
from jax.experimental import pallas as pl
from jax.experimental.pallas import tpu as pltpu


def _language_classifier_kernel(x_ref, w_ref, b_ref, out_ref):
    # x_ref:   (tile_n, C, HW)    activations, spatial (H*W) on the lane axis
    # w_ref:   (K_PAD, C)         fc weight, zero-padded over K, pre-scaled by 1/HW
    # b_ref:   (1, K_PAD)         fc bias, zero-padded over K
    # out_ref: (tile_n, 1, K_PAD) logits (lane-dense rows)
    w = w_ref[...]
    b = b_ref[...]
    tile_n = x_ref.shape[0]
    # tile_n is a small static constant (<= ~32), so a fully unrolled loop of
    # independent per-sample matmuls is fine and keeps every op 2-D.
    for n in range(tile_n):
        # MXU contraction over C in natural (m,k)x(k,n) orientation; 1/HW is
        # already folded into w, so summing over HW afterwards yields
        # sum_c w[k,c] * mean_hw x[n,c,hw].
        s = jnp.dot(w, x_ref[n], preferred_element_type=jnp.float32)   # (K_PAD, HW)
        # Small aligned transpose (<= 128 x HW) + sublane reduce -> lane-dense row.
        row = jnp.sum(s.T, axis=0, keepdims=True) + b                  # (1, K_PAD)
        out_ref[n] = row.astype(out_ref.dtype)


def _pick_tile_n(N, C, HW, itemsize):
    """Batch tile: ~8 MiB x-blocks, >= 2 grid steps, multiple of 8 when large."""
    per_sample = max(1, C * HW * itemsize)
    tile = max(1, (8 << 20) // per_sample)     # 2x buffers stay well under 32 MiB
    tile = min(tile, 32)                       # keep the in-kernel unroll modest
    if N >= 2:
        tile = min(tile, N // 2)               # >= 2 steps: pipelining + v7x megacore
    tile = max(1, min(tile, N))
    if tile >= 8:
        tile -= tile % 8                       # keep blocks uniform for larger N
    return tile


def language_classifier_forward(x, fc_weight, fc_bias):
    """x: (N, C, H, W); fc_weight: (K, C); fc_bias: (K,). Returns (N, K) logits."""
    N, C, H, W = x.shape
    K = fc_weight.shape[0]
    HW = H * W
    K_PAD = max(128, ((K + 127) // 128) * 128)   # lane-dense output stores

    # Pure reshape (no transpose, no extra HBM round-trip): NCHW -> (N, C, H*W).
    x2 = x.reshape(N, C, HW)

    # Tiny one-time glue on the resident weight: fold the 1/HW mean in and
    # zero-pad the class dim to a full lane width (zero rows -> zero logits,
    # sliced away below).
    w_scaled = fc_weight.astype(jnp.float32) / jnp.float32(HW)          # (K, C)
    w_p = jnp.zeros((K_PAD, C), jnp.float32).at[:K, :].set(w_scaled)
    b_p = jnp.zeros((1, K_PAD), jnp.float32).at[0, :K].set(fc_bias.astype(jnp.float32))

    tile_n = _pick_tile_n(N, C, HW, x.dtype.itemsize)
    grid = (pl.cdiv(N, tile_n),)
    # If tile_n does not divide N, the last block's padded rows hold undefined
    # data and are computed, but each output row depends only on its own input
    # row and the out-of-bounds writeback is masked, so stored results are OK.

    out3 = pl.pallas_call(
        _language_classifier_kernel,
        out_shape=jax.ShapeDtypeStruct((N, 1, K_PAD), x.dtype),
        grid_spec=pltpu.PrefetchScalarGridSpec(
            num_scalar_prefetch=0,
            grid=grid,
            in_specs=[
                pl.BlockSpec((tile_n, C, HW), lambda i: (i, 0, 0)),
                pl.BlockSpec((K_PAD, C), lambda i: (0, 0)),   # VMEM-resident weight
                pl.BlockSpec((1, K_PAD), lambda i: (0, 0)),   # VMEM-resident bias
            ],
            out_specs=pl.BlockSpec((tile_n, 1, K_PAD), lambda i: (i, 0, 0)),
        ),
        compiler_params=pltpu.CompilerParams(
            dimension_semantics=("parallel",),
            vmem_limit_bytes=32 << 20,   # leaves headroom on v7x's 64 MiB VMEM
        ),
    )(x2, w_p, b_p)

    # Drop the class padding outside the kernel (contiguous reshape + slice).
    return out3.reshape(N, K_PAD)[:, :K]


def _reference(x, fc_weight, fc_bias):
    """Pure-JAX reference of the PyTorch forward."""
    pooled = jnp.mean(x, axis=(2, 3))           # AdaptiveAvgPool2d((1,1)) + flatten
    return pooled @ fc_weight.T + fc_bias       # nn.Linear


if __name__ == "__main__":
    # Small shapes consistent with the module: batch=2, channels = 512 * expansion
    # (BasicBlock expansion = 1), spatial 8x16 (H*W = 128, lane-dense), 8 classes.
    N, C, H, W = 2, 512, 8, 16
    K = 8

    key = jax.random.PRNGKey(0)
    kx, kw, kb = jax.random.split(key, 3)

    x = jax.random.normal(kx, (N, C, H, W), jnp.float32)
    fc_weight = jax.random.normal(kw, (K, C), jnp.float32) / jnp.sqrt(jnp.float32(C))
    fc_bias = 0.1 * jax.random.normal(kb, (K,), jnp.float32)

    out = language_classifier_forward(x, fc_weight, fc_bias)
    out = jax.block_until_ready(out)

    ref = _reference(x, fc_weight, fc_bias)
    assert out.shape == (N, K)
    assert jnp.allclose(out, ref, atol=1e-4, rtol=1e-5), "Pallas output mismatch vs reference"

    print("KERNEL_OK")
</pallas_src>

<mosaic_0001>
module attributes {stable_mosaic.version = 11 : i64} {
  func.func @_language_classifier_kernel(%arg0: i32, %arg1: memref<1x512x128xf32, #tpu.memory_space<vmem>>, %arg2: memref<128x512xf32, #tpu.memory_space<vmem>>, %arg3: memref<1x128xf32, #tpu.memory_space<vmem>>, %arg4: memref<1x1x128xf32, #tpu.memory_space<vmem>>) attributes {dimension_semantics = [#tpu.dimension_semantics<parallel>], iteration_bounds = array<i64: 2>, scalar_prefetch = 0 : i64, scratch_operands = 0 : i64, tpu.core_type = #tpu.core_type<tc>, window_params = [{transform_indices = @transform_0, window_bounds = array<i64: 1, 512, 128>}, {pipeline_mode = #tpu.pipeline_mode<synchronous>, transform_indices = @transform_1, window_bounds = array<i64: 128, 512>}, {pipeline_mode = #tpu.pipeline_mode<synchronous>, transform_indices = @transform_2, window_bounds = array<i64: 1, 128>}, {transform_indices = @transform_3, window_bounds = array<i64: 1, 1, 128>}]} {
    %c0 = arith.constant 0 : index
    %c0_0 = arith.constant 0 : index
    %0 = vector.load %arg2[%c0, %c0_0] : memref<128x512xf32, #tpu.memory_space<vmem>>, vector<128x512xf32>
    %c0_1 = arith.constant 0 : index
    %c0_2 = arith.constant 0 : index
    %1 = vector.load %arg3[%c0_1, %c0_2] : memref<1x128xf32, #tpu.memory_space<vmem>>, vector<1x128xf32>
    %c0_3 = arith.constant 0 : index
    %c0_4 = arith.constant 0 : index
    %c0_5 = arith.constant 0 : index
    %2 = vector.load %arg1[%c0_3, %c0_4, %c0_5] : memref<1x512x128xf32, #tpu.memory_space<vmem>>, vector<1x512x128xf32>
    %3 = vector.shape_cast %2 : vector<1x512x128xf32> to vector<512x128xf32>
    %cst = arith.constant dense<0.000000e+00> : vector<128x128xf32>
    %4 = tpu.matmul %0, %3, %cst {dimension_numbers = #tpu.dot_dimension_numbers<[1], [0], [0], [1], [0, 0, 1, 1], [], []>} : vector<128x512xf32>, vector<512x128xf32>, vector<128x128xf32> -> vector<128x128xf32>
    %5 = tpu.transpose %4, [1, 0] : vector<128x128xf32> -> vector<128x128xf32>
    %cst_6 = arith.constant dense<0.000000e+00> : vector<128xf32>
    %6 = vector.multi_reduction <add>, %5, %cst_6 [0] : vector<128x128xf32> to vector<128xf32>
    %7 = vector.shape_cast %6 : vector<128xf32> to vector<1x128xf32>
    %8 = arith.addf %7, %1 : vector<1x128xf32>
    %c0_7 = arith.constant 0 : index
    %c0_8 = arith.constant 0 : index
    %c0_9 = arith.constant 0 : index
    %9 = vector.load %arg4[%c0_7, %c0_8, %c0_9] : memref<1x1x128xf32, #tpu.memory_space<vmem>>, vector<1x1x128xf32>
    %10 = vector.shape_cast %9 : vector<1x1x128xf32> to vector<1x128xf32>
    %11 = vector.shape_cast %8 : vector<1x128xf32> to vector<1x1x128xf32>
    tpu.vector_store %arg4[%c0_7, %c0_8, %c0_9], %11 {strides = array<i32>} : memref<1x1x128xf32, #tpu.memory_space<vmem>>, vector<1x1x128xf32>,
    return
  }
  func.func @transform_0(%arg0: i32) -> (i32, i32, i32) {
    %c0_i32 = arith.constant 0 : i32
    %c0_i32_0 = arith.constant 0 : i32
    %c0_i32_1 = arith.constant 0 : i32
    return %arg0, %c0_i32, %c0_i32_0 : i32, i32, i32
  }
  func.func @transform_1(%arg0: i32) -> (i32, i32) {
    %c0_i32 = arith.constant 0 : i32
    %c0_i32_0 = arith.constant 0 : i32
    %c0_i32_1 = arith.constant 0 : i32
    return %c0_i32, %c0_i32_0 : i32, i32
  }
  func.func @transform_2(%arg0: i32) -> (i32, i32) {
    %c0_i32 = arith.constant 0 : i32
    %c0_i32_0 = arith.constant 0 : i32
    %c0_i32_1 = arith.constant 0 : i32
    return %c0_i32, %c0_i32_0 : i32, i32
  }
  func.func @transform_3(%arg0: i32) -> (i32, i32, i32) {
    %c0_i32 = arith.constant 0 : i32
    %c0_i32_0 = arith.constant 0 : i32
    %c0_i32_1 = arith.constant 0 : i32
    return %arg0, %c0_i32, %c0_i32_0 : i32, i32, i32
  }
}

</mosaic_0001>

<bundles_post_ra>
// kernel: tpu_custom_call.1
= control target key start
LH: loop header
LB: loop body
LE: loop exit
PB: predicated region body
PF: predicated region fallthrough
CT: control target
= control target key end

     0   :  { %8 = vsyncpa [#allocation3], 0  ;;  %s1181_s0 = inlined_call_operand.hbm [shape: f32[2,512,128], index: 0, kind: input, shape index: {}]   ;;  %s1182_s1 = inlined_call_operand.hbm [shape: f32[128,512], index: 1, kind: input, shape index: {}]   ;;  %s1183_s2 = inlined_call_operand.vmem [shape: f32[1,128], index: 2, kind: input, shape index: {}]   ;;  %s1184_s3 = inlined_call_operand.hbm [shape: f32[2,1,128], index: 3, kind: output, shape index: {}]  }
   0x1   :  { %10 = vsyncpa [#allocation3 + $0x1], 0 }
   0x2   :  { %11 = vsyncpa [#allocation6], 0 }
   0x3   :  { %12 = vsyncpa [#allocation4], 0 }
   0x4   :  { %14 = vsyncpa [#allocation4 + $0x1], 0  ;;  %s971_s12 = smov 0   ;;  %s973_s13 = smov 0  }
   0x5   :  { %s975_s14 = smov 0   ;;  %s977_s15 = smov 0  }
   0x6 LB: > { %s992_s16 = sadd.s32 4294967295, %s944_s15   ;;  %s740_s17 = sadd.s32 4294967294, %s944_s15   ;;  %s944_s15 = sphi %s977_s15, %s1194_s15   ;;  %s940_s14 = sphi %s975_s14, %s1193_s14   ;;  %s936_s13 = sphi %s973_s13, %s1192_s13   ;;  %s932_s12 = sphi %s971_s12, %s1191_s12  }
   0x7   : > { %p40_p0 = scmp.ne.s32.totalorder %s936_s13, %s932_s12  ;;  %p41_p1 = scmp.eq.s32.totalorder %s992_s16, 0 }
   0x8   : > { %p106_p2 = scmp.eq.s32.totalorder %s992_s16, 1  ;;  %p112_p3 = scmp.eq.s32.totalorder %s740_s17, 1 }
   0x9   : > { %p1001_p4 = por %p41_p1, %p40_p0  ;;  %p741_p5 = scmp.ge.s32.totalorder %s944_s15, 1 }
   0xa   : > { %p1006_p6 = por %p112_p3, %p40_p0  ;;  %p119_p7 = scmp.lt.s32.totalorder %s944_s15, 3 }
   0xb   : > { %s130_s22 = sshll.u32 %s1182_s1, 4  ;;  %s946_s24 = smov [#allocation5]   ;;  %s131_s22 = int_to_ptr.hbm [resolvable:$true] %s130_s22 }
   0xc   : > { %p1014_p8 = pnand %p741_p5, %p119_p7  ;;  %s132_s25 = sshll.u32 %s946_s24, 4  ;;  %s133_s25 = int_to_ptr.vmem [resolvable:$true] %s132_s25 }
   0xd   : > { %s1024_s26 = sadd.s32 1, %s944_s15   ;;  %s947_s27 = smov 512  }
   0xe   : > { %p761_p9 = pneg %p1014_p8  ;;  %s948_s28 = smov 32  }
   0xf   : > { %s24_s29 = ssub.s32 %s944_s15, %s1024_s26  ;;  %s27_s30 = sadd.s32 1, %s940_s14 }
  0x10   : > { %p762_p10 = pnand %p761_p9, %p41_p1  ;;  %p25_p12 = scmp.eq.s32.totalorder %s24_s29, 0 }
  0x11   : > { %p34_p13 = scmp.ne.s32.totalorder %s940_s14, %s936_s13  ;;  %p35_p0 = scmp.eq.s32.totalorder %s944_s15, 0 }
  0x12   : > { %764 = dma.hbm_to_vmem [thread:$0]  (!%p762_p10), %s131_s22, 8192, %s133_s25, [#allocation6], %s947_s27, %s947_s27, %s948_s28  }
  0x13   : > { %p774_p3 = scmp.lt.s32.totalorder %s944_s15, 2  ;;  %p36_p5 = por %p35_p0, %p34_p13 }
  0x14   : > { %s1034_s4 = scalar_select %p25_p12, %s940_s14, %s27_s30  }
  0x15   : > { %p1038_p7 = por %p106_p2, %p34_p13  ;;  %s149_s6 = sand.u32 1, %s940_s14  }
  0x16   : > { %s752_s7 = sshll.u32 %s944_s15, 9  ;;  %s744_s8 = sshll.u32 %s149_s6, 9 }
  0x17   : > { %s158_s11 = scalar_lea.hbm %s1181_s0, %s752_s7  ;;  %s153_s20 = scalar_lea.vmem [#allocation2], %s744_s8 }
  0x18   : > { %s159_s17 = sshll.u32 %s158_s11, 4  ;;  %s161_s21 = sshll.u32 %s153_s20, 4  ;;  %s160_s17 = int_to_ptr.hbm [resolvable:$true] %s159_s17  ;;  %s162_s21 = int_to_ptr.vmem [resolvable:$true] %s161_s21 }
  0x19   : > { %p1049_p9 = pnand %p774_p3, %p36_p5  ;;  %s150_s24 = scalar_lea.sflag [#allocation3], %s149_s6 }
  0x1a   : > { %s844_s25 = sshra.s32 %s160_s17, 4  ;;  %s851_s30 = scalar_lea.hbm %s1181_s0, 1024  ;;  %s845_s25 = int_to_ptr.hbm [resolvable:$true] %s844_s25 }
  0x1b   : > { %s846_s27 = scalar_lea.hbm %s845_s25, 512  ;;  %p848_p10 = pneg %p1049_p9 }
  0x1c   : > { %p847_p2 = scmp.ne.s32.totalorder %s845_s25, %s846_s27  ;;  %p852_p0 = scmp.lt.s32.totalorder %s845_s25, %s1181_s0 }
  0x1d   : > { %p853_p3 = scmp.lt.s32.totalorder %s851_s30, %s846_s27 }
  0x1e   : > { %p849_p12 = pnand %p848_p10, %p847_p2 }
  0x1f   : > { %p854_p5 = por %p853_p3, %p852_p0 }
  0x20   : > { %p850_p13 = pneg %p849_p12 }
  0x22   : > { %p855_p11 = pnand %p854_p5, %p850_p13 }
  0x24   : > { %858 = shalt.err (!%p855_p11)
}
  0x25   : > { %s949_s6 = smov 128   ;;  %s950_s9 = smov 8  }
  0x26   : > { %768 = dma.hbm_to_vmem [thread:$0]  (!%p1049_p9), %s160_s17, 8192, %s162_s21, %s150_s24, %s949_s6, %s949_s6, %s950_s9  }
  0x27   : > { %173 = sbr.rel (%p1014_p8) target bundleno = 520 (0x208), region = 32  ;;  %s1066_s10 = sand.u32 (!%p1014_p8), 1, %s936_s13  }
  0x28   : > { %s748_s11 = sshll.u32 (!%p1014_p8), %s1066_s10, 9  ;;  %s176_s20 = scalar_lea.sflag (!%p1014_p8), [#allocation3], %s1066_s10 }
  0x29   : > { %s1070_s25 = scalar_lea.vmem (!%p1014_p8), [#allocation2], %s748_s11 }
  0x2c   : > { %919 = dma.done.wait (%p1001_p4), %s176_s20, 8192  }
  0x2d   : > { %921 = vsyncadd (%p1001_p4), %s176_s20, 4294959104 }
  0x2e   : > { %923 = dma.done.wait (%p41_p1), [#allocation6], 8192  }
  0x2f   : > { %925 = vsyncadd (%p41_p1), [#allocation6], 4294959104  ;;  %v319_v0 = vld [vmem:[%s1070_s25 + $0x178] sm:$0xff]  ;;  %v318_v1 = vld [vmem:[%s1070_s25 + $0x170] sm:$0xff]  ;;  %s660_s17 = scalar_lea.hbm %s1184_s3, %s992_s16  ;;  %s206_s24 = scalar_lea.vmem [#allocation7], %s1066_s10 }
  0x30   : > { %v335_v2 = vld [vmem:[%s1070_s25 + $0x1f8] sm:$0xff]  ;;  %466 = vmatpush.msra.mxu2 %v319_v0  ;;  %v317_v5 = vld [vmem:[%s1070_s25 + $0x168] sm:$0xff]  ;;  %v334_v6 = vld [vmem:[%s1070_s25 + $0x1f0] sm:$0xff]  ;;  %s662_s27 = sshll.u32 %s206_s24, 4  ;;  %s664_s28 = sshll.u32 %s660_s17, 4  ;;  %s663_s27 = int_to_ptr.vmem [resolvable:$true] %s662_s27  ;;  %s665_s28 = int_to_ptr.hbm [resolvable:$true] %s664_s28 }
  0x31   : > { %531 = vmatpush.msra.mxu3 %v335_v2  ;;  %v287_v3 = vld [vmem:[%s1070_s25 + $0x78] sm:$0xff]  ;;  %v286_v7 = vld [vmem:[%s1070_s25 + $0x70] sm:$0xff]  ;;  %v333_v9 = vld [vmem:[%s1070_s25 + $0x1e8] sm:$0xff]  ;;  %s652_s29 = scalar_lea.sflag [#allocation4], %s1066_s10  ;;  %s888_s30 = sshra.s32 %s665_s28, 4  ;;  %s889_s30 = int_to_ptr.hbm [resolvable:$true] %s888_s30 }
  0x32   : > { %v303_v4 = vld [vmem:[%s1070_s25 + $0xf8] sm:$0xff]  ;;  %336 = vmatpush.msra.mxu0 %v287_v3  ;;  %v302_v8 = vld [vmem:[%s1070_s25 + $0xf0] sm:$0xff]  ;;  %467 = vmatpush.msra.mxu2 %v318_v1  ;;  %v285_v10 = vld [vmem:[%s1070_s25 + $0x68] sm:$0xff]  ;;  %s890_s7 = scalar_lea.hbm %s889_s30, 1  ;;  %s894_s6 = scalar_lea.hbm %s1184_s3, 2 }
  0x33   : > { %401 = vmatpush.msra.mxu1 %v303_v4  ;;  %532 = vmatpush.msra.mxu3 %v334_v6  ;;  %v316_v11 = vld [vmem:[%s1070_s25 + $0x160] sm:$0xff]  ;;  %v301_v12 = vld [vmem:[%s1070_s25 + $0xe8] sm:$0xff]  ;;  %v315_v16 = vld [vmem:[%s1070_s25 + $0x158] sm:$0xff]  ;;  %p891_p1 = scmp.ne.s32.totalorder %s889_s30, %s890_s7  ;;  %p895_p11 = scmp.lt.s32.totalorder %s889_s30, %s1184_s3 }
  0x34   : > { %337 = vmatpush.msra.mxu0 %v286_v7  ;;  %v332_v13 = vld [vmem:[%s1070_s25 + $0x1e0] sm:$0xff]  ;;  %468 = vmatpush.msra.mxu2 %v317_v5  ;;  %v331_v17 = vld [vmem:[%s1070_s25 + $0x1d8] sm:$0xff]  ;;  %v314_v20 = vld [vmem:[%s1070_s25 + $0x150] sm:$0xff]  ;;  %p896_p9 = scmp.lt.s32.totalorder %s894_s6, %s890_s7 }
  0x35   : > { %402 = vmatpush.msra.mxu1 %v302_v8  ;;  %533 = vmatpush.msra.mxu3 %v333_v9  ;;  %v284_v14 = vld [vmem:[%s1070_s25 + $0x60] sm:$0xff]  ;;  %v283_v18 = vld [vmem:[%s1070_s25 + $0x58] sm:$0xff]  ;;  %v330_v21 = vld [vmem:[%s1070_s25 + $0x1d0] sm:$0xff]  ;;  %p892_p4 = pnand %p891_p1, %p1038_p7 }
  0x36   : > { %v300_v15 = vld [vmem:[%s1070_s25 + $0xe0] sm:$0xff]  ;;  %338 = vmatpush.msra.mxu0 %v285_v10  ;;  %469 = vmatpush.msra.mxu2 %v316_v11  ;;  %v299_v19 = vld [vmem:[%s1070_s25 + $0xd8] sm:$0xff]  ;;  %v282_v22 = vld [vmem:[%s1070_s25 + $0x50] sm:$0xff]  ;;  %p897_p2 = por %p896_p9, %p895_p11 }
  0x37   : > { %403 = vmatpush.msra.mxu1 %v301_v12  ;;  %534 = vmatpush.msra.mxu3 %v332_v13  ;;  %v298_v23 = vld [vmem:[%s1070_s25 + $0xd0] sm:$0xff]  ;;  %v313_v24 = vld [vmem:[%s1070_s25 + $0x148] sm:$0xff]  ;;  %v312_v28 = vld [vmem:[%s1070_s25 + $0x140] sm:$0xff]  ;;  %p893_p8 = pneg %p892_p4 }
  0x38   : > { %339 = vmatpush.msra.mxu0 %v284_v14  ;;  %470 = vmatpush.msra.mxu2 %v315_v16  ;;  %v329_v25 = vld [vmem:[%s1070_s25 + $0x1c8] sm:$0xff]  ;;  %v328_v29 = vld [vmem:[%s1070_s25 + $0x1c0] sm:$0xff]  ;;  %v311_v32 = vld [vmem:[%s1070_s25 + $0x138] sm:$0xff] }
  0x39   : > { %404 = vmatpush.msra.mxu1 %v300_v15  ;;  %535 = vmatpush.msra.mxu3 %v331_v17  ;;  %v281_v26 = vld [vmem:[%s1070_s25 + $0x48] sm:$0xff]  ;;  %v280_v30 = vld [vmem:[%s1070_s25 + $0x40] sm:$0xff]  ;;  %v327_v33 = vld [vmem:[%s1070_s25 + $0x1b8] sm:$0xff]  ;;  %p898_p10 = pnand %p897_p2, %p893_p8 }
  0x3a   : > { %340 = vmatpush.msra.mxu0 %v283_v18  ;;  %471 = vmatpush.msra.mxu2 %v314_v20  ;;  %v297_v27 = vld [vmem:[%s1070_s25 + $0xc8] sm:$0xff]  ;;  %v296_v31 = vld [vmem:[%s1070_s25 + $0xc0] sm:$0xff]  ;;  %v279_v34 = vld [vmem:[%s1070_s25 + $0x38] sm:$0xff] }
  0x3b   : > { %405 = vmatpush.msra.mxu1 %v299_v19  ;;  %536 = vmatpush.msra.mxu3 %v330_v21  ;;  %v295_v35 = vld [vmem:[%s1070_s25 + $0xb8] sm:$0xff]  ;;  %v310_v36 = vld [vmem:[%s1070_s25 + $0x130] sm:$0xff]  ;;  %v309_v40 = vld [vmem:[%s1070_s25 + $0x128] sm:$0xff] }
  0x3c   : > { %341 = vmatpush.msra.mxu0 %v282_v22  ;;  %472 = vmatpush.msra.mxu2 %v313_v24  ;;  %v326_v37 = vld [vmem:[%s1070_s25 + $0x1b0] sm:$0xff]  ;;  %v325_v41 = vld [vmem:[%s1070_s25 + $0x1a8] sm:$0xff]  ;;  %v308_v44 = vld [vmem:[%s1070_s25 + $0x120] sm:$0xff] }
  0x3d   : > { %406 = vmatpush.msra.mxu1 %v298_v23  ;;  %537 = vmatpush.msra.mxu3 %v329_v25  ;;  %v278_v38 = vld [vmem:[%s1070_s25 + $0x30] sm:$0xff]  ;;  %v277_v42 = vld [vmem:[%s1070_s25 + $0x28] sm:$0xff]  ;;  %v324_v45 = vld [vmem:[%s1070_s25 + $0x1a0] sm:$0xff] }
  0x3e   : > { %342 = vmatpush.msra.mxu0 %v281_v26  ;;  %473 = vmatpush.msra.mxu2 %v312_v28  ;;  %v294_v39 = vld [vmem:[%s1070_s25 + $0xb0] sm:$0xff]  ;;  %v293_v43 = vld [vmem:[%s1070_s25 + $0xa8] sm:$0xff]  ;;  %v276_v46 = vld [vmem:[%s1070_s25 + $0x20] sm:$0xff] }
  0x3f   : > { %407 = vmatpush.msra.mxu1 %v297_v27  ;;  %538 = vmatpush.msra.mxu3 %v328_v29  ;;  %v292_v47 = vld [vmem:[%s1070_s25 + $0xa0] sm:$0xff]  ;;  %v307_v48 = vld [vmem:[%s1070_s25 + $0x118] sm:$0xff]  ;;  %v306_v52 = vld [vmem:[%s1070_s25 + $0x110] sm:$0xff] }
  0x40   : > { %343 = vmatpush.msra.mxu0 %v280_v30  ;;  %474 = vmatpush.msra.mxu2 %v311_v32  ;;  %v323_v49 = vld [vmem:[%s1070_s25 + $0x198] sm:$0xff]  ;;  %v322_v53 = vld [vmem:[%s1070_s25 + $0x190] sm:$0xff]  ;;  %v305_v56 = vld [vmem:[%s1070_s25 + $0x108] sm:$0xff] }
  0x41   : > { %408 = vmatpush.msra.mxu1 %v296_v31  ;;  %539 = vmatpush.msra.mxu3 %v327_v33  ;;  %v275_v50 = vld [vmem:[%s1070_s25 + $0x18] sm:$0xff]  ;;  %v274_v54 = vld [vmem:[%s1070_s25 + $0x10] sm:$0xff]  ;;  %v321_v57 = vld [vmem:[%s1070_s25 + $0x188] sm:$0xff] }
  0x42   : > { %344 = vmatpush.msra.mxu0 %v279_v34  ;;  %475 = vmatpush.msra.mxu2 %v310_v36  ;;  %v291_v51 = vld [vmem:[%s1070_s25 + $0x98] sm:$0xff]  ;;  %v290_v55 = vld [vmem:[%s1070_s25 + $0x90] sm:$0xff]  ;;  %v273_v58 = vld [vmem:[%s1070_s25 + $0x8] sm:$0xff] }
  0x43   : > { %409 = vmatpush.msra.mxu1 %v295_v35  ;;  %540 = vmatpush.msra.mxu3 %v326_v37  ;;  %v289_v59 = vld [vmem:[%s1070_s25 + $0x88] sm:$0xff]  ;;  %v304_v60 = vld [vmem:[%s1070_s25 + $0x100] sm:$0xff]  ;;  %v209_v62 = vld [vmem:[#allocation5 + $0x10] sm:$0xff] }
  0x44   : > { %345 = vmatpush.msra.mxu0 %v278_v38  ;;  %476 = vmatpush.msra.mxu2 %v309_v40  ;;  %v320_v61 = vld [vmem:[%s1070_s25 + $0x180] sm:$0xff]  ;;  %v210_v63 = vld [vmem:[#allocation5 + $0x18] sm:$0xff]  ;;  %v208_v3 = vld [vmem:[#allocation5 + $0x8] sm:$0xff] }
  0x45   : > { %410 = vmatpush.msra.mxu1 %v294_v39  ;;  %541 = vmatpush.msra.mxu3 %v325_v41  ;;  %v272_v0 = vld [vmem:[%s1070_s25] sm:$0xff]  ;;  %v213_v4 = vld [vmem:[#allocation5 + $0x30] sm:$0xff]  ;;  %v214_v5 = vld [vmem:[#allocation5 + $0x38] sm:$0xff] }
  0x46   : > { %346 = vmatpush.msra.mxu0 %v277_v42  ;;  %477 = vmatpush.msra.mxu2 %v308_v44  ;;  %v288_v1 = vld [vmem:[%s1070_s25 + $0x80] sm:$0xff]  ;;  %v212_v7 = vld [vmem:[#allocation5 + $0x28] sm:$0xff]  ;;  %v217_v8 = vld [vmem:[#allocation5 + $0x50] sm:$0xff] }
  0x47   : > { %411 = vmatpush.msra.mxu1 %v293_v43  ;;  %542 = vmatpush.msra.mxu3 %v324_v45  ;;  %v207_v2 = vld [vmem:[#allocation5] sm:$0xff]  ;;  %v218_v9 = vld [vmem:[#allocation5 + $0x58] sm:$0xff]  ;;  %v216_v11 = vld [vmem:[#allocation5 + $0x48] sm:$0xff] }
  0x48   : > { %347 = vmatpush.msra.mxu0 %v276_v46  ;;  %478 = vmatpush.msra.mxu2 %v307_v48  ;;  %v211_v6 = vld [vmem:[#allocation5 + $0x20] sm:$0xff]  ;;  %v221_v12 = vld [vmem:[#allocation5 + $0x70] sm:$0xff]  ;;  %v222_v13 = vld [vmem:[#allocation5 + $0x78] sm:$0xff] }
  0x49   : > { %412 = vmatpush.msra.mxu1 %v292_v47  ;;  %543 = vmatpush.msra.mxu3 %v323_v49  ;;  %v215_v10 = vld [vmem:[#allocation5 + $0x40] sm:$0xff]  ;;  %v220_v15 = vld [vmem:[#allocation5 + $0x68] sm:$0xff]  ;;  %v225_v16 = vld [vmem:[#allocation5 + $0x90] sm:$0xff] }
  0x4a   : > { %348 = vmatpush.msra.mxu0 %v275_v50  ;;  %479 = vmatpush.msra.mxu2 %v306_v52  ;;  %v219_v14 = vld [vmem:[#allocation5 + $0x60] sm:$0xff]  ;;  %v226_v17 = vld [vmem:[#allocation5 + $0x98] sm:$0xff]  ;;  %v224_v19 = vld [vmem:[#allocation5 + $0x88] sm:$0xff] }
  0x4b   : > { %413 = vmatpush.msra.mxu1 %v291_v51  ;;  %544 = vmatpush.msra.mxu3 %v322_v53  ;;  %v223_v18 = vld [vmem:[#allocation5 + $0x80] sm:$0xff]  ;;  %v229_v20 = vld [vmem:[#allocation5 + $0xb0] sm:$0xff]  ;;  %v230_v21 = vld [vmem:[#allocation5 + $0xb8] sm:$0xff] }
  0x4c   : > { %349 = vmatpush.msra.mxu0 %v274_v54  ;;  %480 = vmatpush.msra.mxu2 %v305_v56  ;;  %v227_v22 = vld [vmem:[#allocation5 + $0xa0] sm:$0xff]  ;;  %v228_v23 = vld [vmem:[#allocation5 + $0xa8] sm:$0xff]  ;;  %v233_v24 = vld [vmem:[#allocation5 + $0xd0] sm:$0xff] }
  0x4d   : > { %414 = vmatpush.msra.mxu1 %v290_v55  ;;  %545 = vmatpush.msra.mxu3 %v321_v57  ;;  %v234_v25 = vld [vmem:[#allocation5 + $0xd8] sm:$0xff]  ;;  %v231_v26 = vld [vmem:[#allocation5 + $0xc0] sm:$0xff]  ;;  %v232_v27 = vld [vmem:[#allocation5 + $0xc8] sm:$0xff] }
  0x4e   : > { %350 = vmatpush.msra.mxu0 %v273_v58  ;;  %481 = vmatpush.msra.mxu2 %v304_v60  ;;  %v237_v28 = vld [vmem:[#allocation5 + $0xf0] sm:$0xff]  ;;  %v238_v29 = vld [vmem:[#allocation5 + $0xf8] sm:$0xff]  ;;  %v235_v30 = vld [vmem:[#allocation5 + $0xe0] sm:$0xff] }
  0x4f   : > { %415 = vmatpush.msra.mxu1 %v289_v59  ;;  %546 = vmatpush.msra.mxu3 %v320_v61  ;;  %v236_v31 = vld [vmem:[#allocation5 + $0xe8] sm:$0xff]  ;;  %v241_v32 = vld [vmem:[#allocation5 + $0x110] sm:$0xff]  ;;  %v242_v33 = vld [vmem:[#allocation5 + $0x118] sm:$0xff] }
  0x50   : > { %482 = vmatmul.f32.vlgmr.msra.gmra.mxu2 %v209_v62  ;;  %547 = vmatmul.f32.vlgmr.msra.gmra.mxu3 %v210_v63  ;;  %v239_v34 = vld [vmem:[#allocation5 + $0x100] sm:$0xff]  ;;  %v240_v35 = vld [vmem:[#allocation5 + $0x108] sm:$0xff]  ;;  %v245_v36 = vld [vmem:[#allocation5 + $0x130] sm:$0xff] }
  0x51   : > { %351 = vmatpush.msra.mxu0 %v272_v0  ;;  %416 = vmatpush.msra.mxu1 %v288_v1  ;;  %v246_v37 = vld [vmem:[#allocation5 + $0x138] sm:$0xff]  ;;  %v243_v38 = vld [vmem:[#allocation5 + $0x120] sm:$0xff]  ;;  %v244_v39 = vld [vmem:[#allocation5 + $0x128] sm:$0xff] }
  0x52   : > { %352 = vmatmul.f32.vlgmr.msra.gmra.mxu0 %v207_v2  ;;  %417 = vmatmul.f32.vlgmr.msra.gmra.mxu1 %v208_v3  ;;  %v249_v40 = vld [vmem:[#allocation5 + $0x150] sm:$0xff]  ;;  %v250_v41 = vld [vmem:[#allocation5 + $0x158] sm:$0xff]  ;;  %v247_v42 = vld [vmem:[#allocation5 + $0x140] sm:$0xff] }
  0x53   : > { %v248_v43 = vld [vmem:[#allocation5 + $0x148] sm:$0xff]  ;;  %v253_v44 = vld [vmem:[#allocation5 + $0x170] sm:$0xff]  ;;  %v254_v45 = vld [vmem:[#allocation5 + $0x178] sm:$0xff] }
  0x54   : > { %v251_v46 = vld [vmem:[#allocation5 + $0x160] sm:$0xff]  ;;  %v252_v47 = vld [vmem:[#allocation5 + $0x168] sm:$0xff]  ;;  %v257_v48 = vld [vmem:[#allocation5 + $0x190] sm:$0xff] }
  0x55   : > { %v258_v49 = vld [vmem:[#allocation5 + $0x198] sm:$0xff]  ;;  %v255_v50 = vld [vmem:[#allocation5 + $0x180] sm:$0xff]  ;;  %v256_v51 = vld [vmem:[#allocation5 + $0x188] sm:$0xff] }
  0x56   : > { %v261_v52 = vld [vmem:[#allocation5 + $0x1b0] sm:$0xff]  ;;  %v262_v53 = vld [vmem:[#allocation5 + $0x1b8] sm:$0xff]  ;;  %v259_v54 = vld [vmem:[#allocation5 + $0x1a0] sm:$0xff] }
  0x57   : > { %v260_v55 = vld [vmem:[#allocation5 + $0x1a8] sm:$0xff]  ;;  %v265_v56 = vld [vmem:[#allocation5 + $0x1d0] sm:$0xff]  ;;  %v266_v57 = vld [vmem:[#allocation5 + $0x1d8] sm:$0xff] }
  0x58   : > { %485 = vmatmul.f32.gmra.mxu2 %v213_v4  ;;  %550 = vmatmul.f32.gmra.mxu3 %v214_v5  ;;  %v263_v58 = vld [vmem:[#allocation5 + $0x1c0] sm:$0xff]  ;;  %v264_v59 = vld [vmem:[#allocation5 + $0x1c8] sm:$0xff]  ;;  %v269_v60 = vld [vmem:[#allocation5 + $0x1f0] sm:$0xff] }
  0x59   : > { %v270_v61 = vld [vmem:[#allocation5 + $0x1f8] sm:$0xff]  ;;  %v267_v62 = vld [vmem:[#allocation5 + $0x1e0] sm:$0xff]  ;;  %v268_v63 = vld [vmem:[#allocation5 + $0x1e8] sm:$0xff] }
  0x5a   : > { %355 = vmatmul.f32.gmra.mxu0 %v211_v6  ;;  %420 = vmatmul.f32.gmra.mxu1 %v212_v7 }
  0x60   : > { %488 = vmatmul.f32.gmra.mxu2 %v217_v8  ;;  %553 = vmatmul.f32.gmra.mxu3 %v218_v9 }
  0x62   : > { %358 = vmatmul.f32.gmra.mxu0 %v215_v10  ;;  %423 = vmatmul.f32.gmra.mxu1 %v216_v11 }
  0x68   : > { %491 = vmatmul.f32.gmra.mxu2 %v221_v12  ;;  %556 = vmatmul.f32.gmra.mxu3 %v222_v13 }
  0x6a   : > { %361 = vmatmul.f32.gmra.mxu0 %v219_v14  ;;  %426 = vmatmul.f32.gmra.mxu1 %v220_v15 }
  0x70   : > { %494 = vmatmul.f32.gmra.mxu2 %v225_v16  ;;  %559 = vmatmul.f32.gmra.mxu3 %v226_v17 }
  0x72   : > { %364 = vmatmul.f32.gmra.mxu0 %v223_v18  ;;  %429 = vmatmul.f32.gmra.mxu1 %v224_v19 }
  0x78   : > { %497 = vmatmul.f32.gmra.mxu2 %v229_v20  ;;  %562 = vmatmul.f32.gmra.mxu3 %v230_v21 }
  0x7a   : > { %367 = vmatmul.f32.gmra.mxu0 %v227_v22  ;;  %432 = vmatmul.f32.gmra.mxu1 %v228_v23 }
  0x80   : > { %500 = vmatmul.f32.gmra.mxu2 %v233_v24  ;;  %565 = vmatmul.f32.gmra.mxu3 %v234_v25 }
  0x82   : > { %370 = vmatmul.f32.gmra.mxu0 %v231_v26  ;;  %435 = vmatmul.f32.gmra.mxu1 %v232_v27 }
  0x88   : > { %503 = vmatmul.f32.gmra.mxu2 %v237_v28  ;;  %568 = vmatmul.f32.gmra.mxu3 %v238_v29 }
  0x8a   : > { %373 = vmatmul.f32.gmra.mxu0 %v235_v30  ;;  %438 = vmatmul.f32.gmra.mxu1 %v236_v31 }
  0x90   : > { %506 = vmatmul.f32.gmra.mxu2 %v241_v32  ;;  %571 = vmatmul.f32.gmra.mxu3 %v242_v33 }
  0x92   : > { %376 = vmatmul.f32.gmra.mxu0 %v239_v34  ;;  %441 = vmatmul.f32.gmra.mxu1 %v240_v35 }
  0x98   : > { %509 = vmatmul.f32.gmra.mxu2 %v245_v36  ;;  %574 = vmatmul.f32.gmra.mxu3 %v246_v37 }
  0x9a   : > { %379 = vmatmul.f32.gmra.mxu0 %v243_v38  ;;  %444 = vmatmul.f32.gmra.mxu1 %v244_v39 }
  0xa0   : > { %512 = vmatmul.f32.gmra.mxu2 %v249_v40  ;;  %577 = vmatmul.f32.gmra.mxu3 %v250_v41 }
  0xa2   : > { %382 = vmatmul.f32.gmra.mxu0 %v247_v42  ;;  %447 = vmatmul.f32.gmra.mxu1 %v248_v43 }
  0xa8   : > { %515 = vmatmul.f32.gmra.mxu2 %v253_v44  ;;  %580 = vmatmul.f32.gmra.mxu3 %v254_v45 }
  0xaa   : > { %385 = vmatmul.f32.gmra.mxu0 %v251_v46  ;;  %450 = vmatmul.f32.gmra.mxu1 %v252_v47 }
  0xb0   : > { %518 = vmatmul.f32.gmra.mxu2 %v257_v48  ;;  %583 = vmatmul.f32.gmra.mxu3 %v258_v49 }
  0xb2   : > { %388 = vmatmul.f32.gmra.mxu0 %v255_v50  ;;  %453 = vmatmul.f32.gmra.mxu1 %v256_v51 }
  0xb8   : > { %521 = vmatmul.f32.gmra.mxu2 %v261_v52  ;;  %586 = vmatmul.f32.gmra.mxu3 %v262_v53 }
  0xba   : > { %391 = vmatmul.f32.gmra.mxu0 %v259_v54  ;;  %456 = vmatmul.f32.gmra.mxu1 %v260_v55 }
  0xc0   : > { %524 = vmatmul.f32.gmra.mxu2 %v265_v56  ;;  %589 = vmatmul.f32.gmra.mxu3 %v266_v57 }
  0xc2   : > { %394 = vmatmul.f32.gmra.mxu0 %v263_v58  ;;  %459 = vmatmul.f32.gmra.mxu1 %v264_v59 }
  0xc8   : > { %527 = vmatmul.f32.gmra.mxu2 %v269_v60  ;;  %592 = vmatmul.f32.gmra.mxu3 %v270_v61 }
  0xca   : > { %397 = vmatmul.f32.gmra.mxu0 %v267_v62  ;;  %462 = vmatmul.f32.gmra.mxu1 %v268_v63 }
  0xcf   : > { %v353_v0 = vpop.f32.mrf.mxu0  ;;  %v418_v1 = vpop.f32.mrf.mxu1 }
  0xd0   : > { %v419_v2 = vadd.f32 %v418_v1, %v353_v0 }
  0xd3   : > { %v483_v3 = vpop.f32.mrf.mxu2  ;;  %v548_v4 = vpop.f32.mrf.mxu3 }
  0xd4   : > { %v484_v5 = vadd.f32 %v483_v3, %v419_v2 }
  0xd6   : > { %v549_v6 = vadd.f32 %v548_v4, %v484_v5 }
  0xd7   : > { %v356_v7 = vpop.f32.mrf.mxu0  ;;  %v421_v8 = vpop.f32.mrf.mxu1 }
  0xd8   : > { %596 = vxpose.xlu0.b32.start [1/16] %v549_v6, 128  ;;  %v422_v9 = vadd.f32 %v421_v8, %v356_v7 }
  0xdb   : > { %v486_v10 = vpop.f32.mrf.mxu2  ;;  %v551_v11 = vpop.f32.mrf.mxu3 }
  0xdc   : > { %v487_v12 = vadd.f32 %v486_v10, %v422_v9 }
  0xde   : > { %v552_v13 = vadd.f32 %v551_v11, %v487_v12 }
  0xdf   : > { %v359_v14 = vpop.f32.mrf.mxu0  ;;  %v424_v15 = vpop.f32.mrf.mxu1 }
  0xe0   : > { %597 = vxpose.xlu0.b32.cont [2/16] %v552_v13, 128  ;;  %v425_v16 = vadd.f32 %v424_v15, %v359_v14 }
  0xe3   : > { %v489_v17 = vpop.f32.mrf.mxu2  ;;  %v554_v18 = vpop.f32.mrf.mxu3 }
  0xe4   : > { %v490_v19 = vadd.f32 %v489_v17, %v425_v16 }
  0xe6   : > { %v555_v20 = vadd.f32 %v554_v18, %v490_v19 }
  0xe7   : > { %v362_v21 = vpop.f32.mrf.mxu0  ;;  %v427_v22 = vpop.f32.mrf.mxu1 }
  0xe8   : > { %598 = vxpose.xlu0.b32.cont [3/16] %v555_v20, 128  ;;  %v428_v23 = vadd.f32 %v427_v22, %v362_v21 }
  0xeb   : > { %v492_v24 = vpop.f32.mrf.mxu2  ;;  %v557_v25 = vpop.f32.mrf.mxu3 }
  0xec   : > { %v493_v26 = vadd.f32 %v492_v24, %v428_v23 }
  0xee   : > { %v558_v27 = vadd.f32 %v557_v25, %v493_v26 }
  0xef   : > { %v365_v28 = vpop.f32.mrf.mxu0  ;;  %v430_v29 = vpop.f32.mrf.mxu1 }
  0xf0   : > { %599 = vxpose.xlu0.b32.cont [4/16] %v558_v27, 128  ;;  %v431_v30 = vadd.f32 %v430_v29, %v365_v28 }
  0xf3   : > { %v495_v31 = vpop.f32.mrf.mxu2  ;;  %v560_v32 = vpop.f32.mrf.mxu3 }
  0xf4   : > { %v496_v33 = vadd.f32 %v495_v31, %v431_v30 }
  0xf6   : > { %v561_v34 = vadd.f32 %v560_v32, %v496_v33 }
  0xf7   : > { %v368_v35 = vpop.f32.mrf.mxu0  ;;  %v433_v36 = vpop.f32.mrf.mxu1 }
  0xf8   : > { %600 = vxpose.xlu0.b32.cont [5/16] %v561_v34, 128  ;;  %v434_v37 = vadd.f32 %v433_v36, %v368_v35 }
  0xfb   : > { %v498_v38 = vpop.f32.mrf.mxu2  ;;  %v563_v39 = vpop.f32.mrf.mxu3 }
  0xfc   : > { %v499_v40 = vadd.f32 %v498_v38, %v434_v37 }
  0xfe   : > { %v564_v41 = vadd.f32 %v563_v39, %v499_v40 }
  0xff   : > { %v371_v42 = vpop.f32.mrf.mxu0  ;;  %v436_v43 = vpop.f32.mrf.mxu1 }
 0x100   : > { %601 = vxpose.xlu0.b32.cont [6/16] %v564_v41, 128  ;;  %v437_v44 = vadd.f32 %v436_v43, %v371_v42 }
 0x103   : > { %v501_v45 = vpop.f32.mrf.mxu2  ;;  %v566_v46 = vpop.f32.mrf.mxu3 }
 0x104   : > { %v502_v47 = vadd.f32 %v501_v45, %v437_v44 }
 0x106   : > { %v567_v48 = vadd.f32 %v566_v46, %v502_v47 }
 0x107   : > { %v374_v49 = vpop.f32.mrf.mxu0  ;;  %v439_v50 = vpop.f32.mrf.mxu1 }
 0x108   : > { %602 = vxpose.xlu0.b32.cont [7/16] %v567_v48, 128  ;;  %v440_v51 = vadd.f32 %v439_v50, %v374_v49 }
 0x10b   : > { %v504_v52 = vpop.f32.mrf.mxu2  ;;  %v569_v53 = vpop.f32.mrf.mxu3 }
 0x10c   : > { %v505_v54 = vadd.f32 %v504_v52, %v440_v51 }
 0x10e   : > { %v570_v55 = vadd.f32 %v569_v53, %v505_v54 }
 0x10f   : > { %v377_v56 = vpop.f32.mrf.mxu0  ;;  %v442_v57 = vpop.f32.mrf.mxu1 }
 0x110   : > { %603 = vxpose.xlu0.b32.cont [8/16] %v570_v55, 128  ;;  %v443_v58 = vadd.f32 %v442_v57, %v377_v56 }
 0x113   : > { %v507_v59 = vpop.f32.mrf.mxu2  ;;  %v572_v60 = vpop.f32.mrf.mxu3 }
 0x114   : > { %v508_v61 = vadd.f32 %v507_v59, %v443_v58 }
 0x116   : > { %v573_v62 = vadd.f32 %v572_v60, %v508_v61 }
 0x117   : > { %v380_v63 = vpop.f32.mrf.mxu0  ;;  %v445_v0 = vpop.f32.mrf.mxu1 }
 0x118   : > { %604 = vxpose.xlu0.b32.cont [9/16] %v573_v62, 128  ;;  %v446_v1 = vadd.f32 %v445_v0, %v380_v63 }
 0x11b   : > { %v510_v2 = vpop.f32.mrf.mxu2  ;;  %v575_v3 = vpop.f32.mrf.mxu3 }
 0x11c   : > { %v511_v4 = vadd.f32 %v510_v2, %v446_v1 }
 0x11e   : > { %v576_v5 = vadd.f32 %v575_v3, %v511_v4 }
 0x11f   : > { %v383_v6 = vpop.f32.mrf.mxu0  ;;  %v448_v7 = vpop.f32.mrf.mxu1 }
 0x120   : > { %605 = vxpose.xlu0.b32.cont [10/16] %v576_v5, 128  ;;  %v449_v8 = vadd.f32 %v448_v7, %v383_v6 }
 0x123   : > { %v513_v9 = vpop.f32.mrf.mxu2  ;;  %v578_v10 = vpop.f32.mrf.mxu3 }
 0x124   : > { %v514_v11 = vadd.f32 %v513_v9, %v449_v8 }
 0x126   : > { %v579_v12 = vadd.f32 %v578_v10, %v514_v11 }
 0x127   : > { %v386_v13 = vpop.f32.mrf.mxu0  ;;  %v451_v14 = vpop.f32.mrf.mxu1 }
 0x128   : > { %606 = vxpose.xlu0.b32.cont [11/16] %v579_v12, 128  ;;  %v452_v15 = vadd.f32 %v451_v14, %v386_v13 }
 0x12b   : > { %v516_v16 = vpop.f32.mrf.mxu2  ;;  %v581_v17 = vpop.f32.mrf.mxu3 }
 0x12c   : > { %v517_v18 = vadd.f32 %v516_v16, %v452_v15 }
 0x12e   : > { %v582_v19 = vadd.f32 %v581_v17, %v517_v18 }
 0x12f   : > { %v389_v20 = vpop.f32.mrf.mxu0  ;;  %v454_v21 = vpop.f32.mrf.mxu1 }
 0x130   : > { %607 = vxpose.xlu0.b32.cont [12/16] %v582_v19, 128  ;;  %v455_v22 = vadd.f32 %v454_v21, %v389_v20  ;;  %v271_v20 = vld [vmem:[%s1183_s2] sm:$0x1] }
 0x133   : > { %v519_v23 = vpop.f32.mrf.mxu2  ;;  %v584_v24 = vpop.f32.mrf.mxu3 }
 0x134   : > { %v520_v25 = vadd.f32 %v519_v23, %v455_v22 }
 0x136   : > { %v585_v26 = vadd.f32 %v584_v24, %v520_v25 }
 0x137   : > { %v392_v27 = vpop.f32.mrf.mxu0  ;;  %v457_v28 = vpop.f32.mrf.mxu1 }
 0x138   : > { %608 = vxpose.xlu0.b32.cont [13/16] %v585_v26, 128  ;;  %v458_v29 = vadd.f32 %v457_v28, %v392_v27 }
 0x13b   : > { %v522_v30 = vpop.f32.mrf.mxu2  ;;  %v587_v31 = vpop.f32.mrf.mxu3 }
 0x13c   : > { %v523_v32 = vadd.f32 %v522_v30, %v458_v29 }
 0x13e   : > { %v588_v33 = vadd.f32 %v587_v31, %v523_v32 }
 0x13f   : > { %v395_v34 = vpop.f32.mrf.mxu0  ;;  %v460_v35 = vpop.f32.mrf.mxu1 }
 0x140   : > { %609 = vxpose.xlu0.b32.cont [14/16] %v588_v33, 128  ;;  %v461_v36 = vadd.f32 %v460_v35, %v395_v34 }
 0x143   : > { %v525_v37 = vpop.f32.mrf.mxu2  ;;  %v590_v38 = vpop.f32.mrf.mxu3 }
 0x144   : > { %v526_v39 = vadd.f32 %v525_v37, %v461_v36 }
 0x146   : > { %v591_v40 = vadd.f32 %v590_v38, %v526_v39 }
 0x147   : > { %v398_v41 = vpop.f32.mrf.mxu0  ;;  %v463_v42 = vpop.f32.mrf.mxu1 }
 0x148   : > { %610 = vxpose.xlu0.b32.cont [15/16] %v591_v40, 128  ;;  %v464_v43 = vadd.f32 %v463_v42, %v398_v41 }
 0x14b   : > { %v528_v44 = vpop.f32.mrf.mxu2  ;;  %v593_v45 = vpop.f32.mrf.mxu3 }
 0x14c   : > { %v529_v46 = vadd.f32 %v528_v44, %v464_v43 }
 0x14e   : > { %v594_v47 = vadd.f32 %v593_v45, %v529_v46 }
 0x150   : > { %611 = vxpose.xlu0.b32.end [16/16] %v594_v47, 128 }
 0x17c   : > { %v612_v48 = vpop.trf.xlu0 }
 0x184   : > { %v613_v49 = vpop.trf.xlu0 }
 0x185   : > { %v628_v50 = vadd.f32 %v613_v49, %v612_v48 }
 0x18c   : > { %v614_v51 = vpop.trf.xlu0 }
 0x18d   : > { %v629_v52 = vadd.f32 %v628_v50, %v614_v51 }
 0x194   : > { %v615_v53 = vpop.trf.xlu0 }
 0x195   : > { %v630_v54 = vadd.f32 %v629_v52, %v615_v53 }
 0x19c   : > { %v616_v55 = vpop.trf.xlu0 }
 0x19d   : > { %v631_v56 = vadd.f32 %v630_v54, %v616_v55 }
 0x1a4   : > { %v617_v57 = vpop.trf.xlu0 }
 0x1a5   : > { %v632_v1 = vadd.f32 %v631_v56, %v617_v57 }
 0x1ac   : > { %v618_v58 = vpop.trf.xlu0 }
 0x1ad   : > { %v633_v2 = vadd.f32 %v632_v1, %v618_v58 }
 0x1b4   : > { %v619_v59 = vpop.trf.xlu0 }
 0x1b5   : > { %v634_v4 = vadd.f32 %v633_v2, %v619_v59 }
 0x1bc   : > { %v620_v60 = vpop.trf.xlu0 }
 0x1bd   : > { %v635_v5 = vadd.f32 %v634_v4, %v620_v60 }
 0x1c4   : > { %v621_v61 = vpop.trf.xlu0 }
 0x1c5   : > { %v636_v6 = vadd.f32 %v635_v5, %v621_v61 }
 0x1cc   : > { %v622_v62 = vpop.trf.xlu0 }
 0x1cd   : > { %v637_v7 = vadd.f32 %v636_v6, %v622_v62 }
 0x1d4   : > { %v623_v63 = vpop.trf.xlu0 }
 0x1d5   : > { %v638_v9 = vadd.f32 %v637_v7, %v623_v63 }
 0x1dc   : > { %v624_v0 = vpop.trf.xlu0 }
 0x1dd   : > { %v639_v10 = vadd.f32 %v638_v9, %v624_v0 }
 0x1e4   : > { %v625_v3 = vpop.trf.xlu0 }
 0x1e5   : > { %v640_v11 = vadd.f32 %v639_v10, %v625_v3 }
 0x1ec   : > { %v626_v8 = vpop.trf.xlu0 }
 0x1ed   : > { %v641_v12 = vadd.f32 %v640_v11, %v626_v8 }
 0x1f4   : > { %v627_v13 = vpop.trf.xlu0 }
 0x1f5   : > { %v642_v14 = vadd.f32 %v641_v12, %v627_v13 }
 0x1f7   : > { %v643_v15 = vrot.slane %v642_v14, 4 }
 0x1f9   : > { %v644_v16 = vadd.f32 %v643_v15, %v642_v14 }
 0x1fb   : > { %v645_v17 = vrot.slane %v644_v16, 2 }
 0x1fd   : > { %v646_v18 = vadd.f32 %v645_v17, %v644_v16 }
 0x1ff   : > { %v647_v19 = vrot.slane %v646_v18, 1 }
 0x201   : > { %v648_v21 = vadd.f32 %v647_v19, %v646_v18 }
 0x203   : > { %v649_v22 = vadd.f32 %v648_v21, %v271_v20 }
 0x205   : > { %650 = vst [vmem:[%s206_s24] sm:$0x1] %v649_v22 }
 0x206   : > { %901 = shalt.err (!%p898_p10)
}
 0x207   : > { %759 = dma.vmem_to_hbm [thread:$0]  (%p1038_p7), %s663_s27, 16, %s665_s28, %s652_s29  }
 0x208 PF: > { %s676_s10 = sand.u32 1, %s932_s12   ;;  %p1190_p12 = scmp.ge.s32.totalorder %s944_s15, 2 }
 0x209   : > { %s677_s20 = scalar_lea.sflag [#allocation4], %s676_s10 }
 0x20a   : > { %p770_p13 = pnand %p1190_p12, %p1006_p6 }
 0x20c   : > { %p771_p0 = pneg %p770_p13 }
 0x20e   : > { %927 = dma.done.wait (%p771_p0), %s677_s20, 16  }
 0x20f   : > { %929 = vsyncadd (%p771_p0), %s677_s20, 4294967280  ;;  %p17_p3 = scmp.ge.s32.totalorder %s1024_s26, 4   ;;  %s1191_s12 = smov %s936_s13 }
 0x210   : > { %s1192_s13 = smov %s940_s14  ;;  %s1193_s14 = smov %s1034_s4 }
 0x211   : > { %s1194_s15 = smov %s1024_s26  ;;  %19 = sbr.rel (!%p17_p3) target bundleno = 6 (0x6), region = 81 }
 0x216   :  { %682 = vsyncpa [#allocation3], 1 }
 0x217   :  { %684 = vsyncpa [#allocation3 + $0x1], 1 }
 0x218   :  { %685 = vsyncpa [#allocation6], 1 }
 0x219   :  { %686 = vsyncpa [#allocation4], 1 }
 0x21a   :  { %688 = vsyncpa [#allocation4 + $0x1], 1 }

</bundles_post_ra>
